<compile_context>
chip_gen: v7x
topology: tpu7x:2x2x1
jax: 0.10.0
libtpu: 0.0.40
codegen_flags: <defaults>
</compile_context>

<pallas_src>
import numpy as np
import jax
import jax.numpy as jnp
from jax.experimental import pallas as pl
from jax.experimental.pallas import tpu as pltpu

# Irreps spec: list of (multiplicity, l, parity).  Equivalent to e3nn
# "4x0e + 2x1o + 1x2e"  ->  dim = 4*1 + 2*3 + 1*5 = 15.
IRREPS = [(4, 0, 1), (2, 1, -1), (1, 2, 1)]
EPS = 1e-8
CENTERIZE_VECTORS = False
_LANE = 128


def _irreps_dim(irreps):
    return sum(c * (2 * l + 1) for c, l, _ in irreps)


def _build_constants(irreps, centerize_vectors):
    """EquivLayerNorm.__init__ scatter/gather bookkeeping as two dense 0/1
    (D, D) matrices (exact in bf16) plus per-channel 1/count f32 vectors."""
    D = _irreps_dim(irreps)
    scatter_elem = np.zeros(D, np.int64)    # which (irrep, m) element-group
    scatter_irrep = np.zeros(D, np.int64)   # which irrep
    counts_elem = np.zeros(D, np.float64)   # multiplicity of my element-group
    scalar_mask = np.zeros(D, bool)
    idx, last = 0, -1
    for i, (c, l, p) in enumerate(irreps):
        dim = c * (2 * l + 1)
        scatter_elem[idx:idx + dim] = last + np.tile(np.arange(1, 2 + 2 * l), c)
        scatter_irrep[idx:idx + dim] = i
        counts_elem[idx:idx + dim] = c
        if l == 0 and p == 1:
            scalar_mask[idx:idx + dim] = True
        last += 2 * l + 1
        idx += dim
    counts_irrep = np.asarray([c for c, _, _ in irreps], np.float64)
    counts_unbiased = np.maximum(1.0, counts_irrep - 1.0)

    # 0/1 "same element-group" matrix (columns masked to scalar channels when
    # centerize_vectors=False) -> group-sum for the mean; 0/1 "same irrep"
    # matrix -> fused norm2 + expand.  Both are exact in bf16.
    pair_mat = (scatter_elem[:, None] == scatter_elem[None, :]).astype(np.float32)
    if not centerize_vectors:
        pair_mat = pair_mat * scalar_mask[None, :].astype(np.float32)
    n2x_mat = (scatter_irrep[:, None] == scatter_irrep[None, :]).astype(np.float32)

    inv_count_elem = (1.0 / counts_elem).astype(np.float32)
    inv_count_unb = (1.0 / counts_unbiased[scatter_irrep]).astype(np.float32)

    return dict(D=D, scatter_irrep=scatter_irrep,
                pair_mat=pair_mat, n2x_mat=n2x_mat,
                inv_count_elem=inv_count_elem, inv_count_unb=inv_count_unb)


def _equiv_ln_kernel(x_ref, pair_ref, n2x_ref, p_ref, o_ref, lhs_ref):
    x = x_ref[...].astype(jnp.float32)                      # (tile, W) lane-dense
    prm = p_ref[...]                                        # (4, W) f32
    W = x.shape[-1]
    khalf = lhs_ref.shape[-1] // 2                          # 128-aligned K half

    # The alignment-pad lanes [W, khalf) and [khalf+W, 2*khalf) pair with
    # all-zero RHS rows; they only need to hold *finite* data, so clear the
    # staging buffer once per step (cheap, aligned full-width store).
    lhs_ref[...] = jnp.zeros_like(lhs_ref)

    # --- zero_center: per-(irrep, m) mean over the multiplicity axis --------
    # f32 operand split hi/lo into bf16 and fused along K into ONE native bf16
    # MXU pass against the exact 0/1 block-diagonal "same element-group" mask;
    # the 1/count factor is a VPU multiply (kept exact in f32).
    x_hi = x.astype(jnp.bfloat16)
    x_lo = (x - x_hi.astype(jnp.float32)).astype(jnp.bfloat16)
    lhs_ref[:, 0:W] = x_hi                                  # lane offset 0
    lhs_ref[:, khalf:khalf + W] = x_lo                      # lane offset 128
    gsum = jnp.dot(lhs_ref[...], pair_ref[...],
                   preferred_element_type=jnp.float32)
    centered = x - gsum * prm[0:1, :]

    # --- irrep-wise unbiased norm^2, expanded back per channel --------------
    sq = centered * centered
    sq_hi = sq.astype(jnp.bfloat16)
    sq_lo = (sq - sq_hi.astype(jnp.float32)).astype(jnp.bfloat16)
    lhs_ref[:, 0:W] = sq_hi
    lhs_ref[:, khalf:khalf + W] = sq_lo
    n2sum = jnp.dot(lhs_ref[...], n2x_ref[...],
                    preferred_element_type=jnp.float32)

    inv = jax.lax.rsqrt(n2sum * prm[1:2, :] + EPS)          # EUP, no divide
    # scale * normalized + offset, emitted directly in the output dtype
    o_ref[...] = (centered * (inv * prm[2:3, :]) + prm[3:4, :]).astype(o_ref.dtype)


def equiv_layer_norm(feature, scale, offsets, *, irreps=IRREPS,
                     centerize_vectors=CENTERIZE_VECTORS, row_tile=1024):
    """feature: (..., irreps_dim).  scale: (num_irreps,).  offsets: per-irrep
    scalar offset (only used for l==0, p==1 irreps, zeros otherwise)."""
    consts = _build_constants(irreps, centerize_vectors)
    D = consts["D"]
    assert feature.shape[-1] == D
    lead = feature.shape[:-1]

    # ---- lane fold: pack `fold` logical rows into one lane-dense super-row --
    x2 = feature.reshape(-1, D)
    N = x2.shape[0]
    fold = max(1, _LANE // D)                 # 8 for D=15 -> W=120 lanes
    W = fold * D
    Np = ((N + fold - 1) // fold) * fold
    if Np != N:
        x2 = jnp.pad(x2, ((0, Np - N), (0, 0)))
    xf = x2.reshape(Np // fold, W)            # contiguous: reshape is free
    M = Np // fold

    # ---- super-row tile: big (amortize ~0.35us/step), multiple of 8, capped
    # so the grid has >= 2 steps whenever possible (v7x dual-TC sharding). ----
    sub = 8
    if M <= sub:
        tile = M                              # block dim == full array dim
    else:
        tile = max(sub, (min(row_tile, M) // sub) * sub)
        half = -(-((M + 1) // 2) // sub) * sub
        tile = min(tile, half)
    grid = (pl.cdiv(M, tile),)

    # ---- constants: block-diagonal masks, hi/lo halves stacked along K with
    # 128-aligned halves (zero rows in the alignment padding). ----------------
    khalf = ((W + _LANE - 1) // _LANE) * _LANE            # 128 for W=120
    eye = np.eye(fold, dtype=np.float32)
    pair_bd = np.kron(eye, consts["pair_mat"])            # (W, W) 0/1
    n2x_bd = np.kron(eye, consts["n2x_mat"])              # (W, W) 0/1
    pair_k = np.zeros((2 * khalf, W), np.float32)
    n2x_k = np.zeros((2 * khalf, W), np.float32)
    pair_k[0:W] = pair_bd
    pair_k[khalf:khalf + W] = pair_bd
    n2x_k[0:W] = n2x_bd
    n2x_k[khalf:khalf + W] = n2x_bd

    # Parameters folded into one (4, W) f32 stream:
    #   [1/count_elem, 1/count_unbiased, expand_irrepwise(scale), get_offset()]
    prm = np.zeros((4, D), np.float32)
    prm[0] = consts["inv_count_elem"]
    prm[1] = consts["inv_count_unb"]
    prm[2] = np.asarray(scale, np.float32)[consts["scatter_irrep"]]
    off_parts = []
    for i, (c, l, p_) in enumerate(irreps):
        val = float(offsets[i]) if (l == 0 and p_ == 1) else 0.0
        off_parts.append(np.full((c * (2 * l + 1),), val, np.float32))
    prm[3] = np.concatenate(off_parts)
    prm = np.tile(prm, (1, fold))                          # (4, W)

    pair_b = jnp.asarray(pair_k, dtype=jnp.bfloat16)       # 0/1, exact in bf16
    n2x_b = jnp.asarray(n2x_k, dtype=jnp.bfloat16)

    out = pl.pallas_call(
        _equiv_ln_kernel,
        out_shape=jax.ShapeDtypeStruct((M, W), feature.dtype),
        grid_spec=pltpu.PrefetchScalarGridSpec(
            num_scalar_prefetch=0,
            grid=grid,
            in_specs=[
                pl.BlockSpec((tile, W), lambda i: (i, 0)),        # folded rows
                pl.BlockSpec((2 * khalf, W), lambda i: (0, 0)),   # mean mask
                pl.BlockSpec((2 * khalf, W), lambda i: (0, 0)),   # norm2 mask
                pl.BlockSpec((4, W), lambda i: (0, 0)),           # folded params
            ],
            out_specs=pl.BlockSpec((tile, W), lambda i: (i, 0)),
            scratch_shapes=[pltpu.VMEM((tile, 2 * khalf), jnp.bfloat16)],
        ),
        compiler_params=pltpu.CompilerParams(
            dimension_semantics=("parallel",)),
    )(xf, pair_b, n2x_b, jnp.asarray(prm))

    out = out.reshape(Np, D)
    if Np != N:
        out = out[:N]
    return out.reshape(*lead, D)


def reference_forward(x, scale, offsets, irreps=IRREPS, eps=EPS,
                      centerize_vectors=CENTERIZE_VECTORS):
    """Independent NumPy (float64) reference of EquivLayerNorm.forward."""
    x = np.asarray(x, np.float64)
    out = np.zeros_like(x)
    idx = 0
    for i, (c, l, p) in enumerate(irreps):
        dim = c * (2 * l + 1)
        blk = x[..., idx:idx + dim].reshape(*x.shape[:-1], c, 2 * l + 1)
        mean = blk.mean(axis=-2, keepdims=True)
        if (l == 0 and p == 1) or centerize_vectors:
            centered = blk - mean
        else:
            centered = blk
        norm2 = (centered ** 2).sum(axis=(-1, -2)) / max(1, c - 1)
        normalized = centered / np.sqrt(norm2 + eps)[..., None, None]
        off = float(offsets[i]) if (l == 0 and p == 1) else 0.0
        out[..., idx:idx + dim] = (float(scale[i])
                                   * normalized.reshape(*x.shape[:-1], dim) + off)
        idx += dim
    return out


if __name__ == "__main__":
    key = jax.random.PRNGKey(0)
    k1, k2, k3, k4 = jax.random.split(key, 4)
    D = _irreps_dim(IRREPS)

    # (batch=2, points=8, irreps_dim=15)
    feature = jax.random.normal(k1, (2, 8, D), jnp.float32)
    # deterministic parameter values (module init is ones/zeros; perturb so the
    # scale/offset paths are actually exercised)
    scale = np.asarray(1.0 + 0.1 * jax.random.normal(k2, (len(IRREPS),)), np.float32)
    off_raw = np.asarray(0.1 * jax.random.normal(k3, (len(IRREPS),)), np.float32)
    offsets = [float(off_raw[i]) if (l == 0 and p == 1) else 0.0
               for i, (c, l, p) in enumerate(IRREPS)]

    out = jax.block_until_ready(equiv_layer_norm(feature, scale, offsets))
    ref = reference_forward(np.asarray(feature), scale, offsets)
    np.testing.assert_allclose(np.asarray(out), ref, rtol=1e-4, atol=1e-4)

    # Second shape exercises the row-padding path (N % 8 != 0), a multi-step
    # grid, and a partial last block.
    feature2 = jax.random.normal(k4, (3, 50, D), jnp.float32)
    out2 = jax.block_until_ready(equiv_layer_norm(feature2, scale, offsets))
    ref2 = reference_forward(np.asarray(feature2), scale, offsets)
    np.testing.assert_allclose(np.asarray(out2), ref2, rtol=1e-4, atol=1e-4)

    # TODO(synk): the dict-input passthrough branch of forward() is Python glue
    # (wrapping the same feature tensor); it is intentionally left to the caller.
    print("KERNEL_OK")
</pallas_src>

<mosaic_0001>
module attributes {stable_mosaic.version = 11 : i64} {
  func.func @_equiv_ln_kernel(%arg0: i32, %arg1: memref<2x120xf32, #tpu.memory_space<vmem>>, %arg2: memref<256x120xbf16, #tpu.memory_space<vmem>>, %arg3: memref<256x120xbf16, #tpu.memory_space<vmem>>, %arg4: memref<4x120xf32, #tpu.memory_space<vmem>>, %arg5: memref<2x120xf32, #tpu.memory_space<vmem>>, %arg6: memref<2x256xbf16, #tpu.memory_space<vmem>>) attributes {dimension_semantics = [#tpu.dimension_semantics<parallel>], iteration_bounds = array<i64: 1>, scalar_prefetch = 0 : i64, scratch_operands = 1 : i64, tpu.core_type = #tpu.core_type<tc>, window_params = [{transform_indices = @transform_0, window_bounds = array<i64: 2, 120>}, {pipeline_mode = #tpu.pipeline_mode<synchronous>, transform_indices = @transform_1, window_bounds = array<i64: 256, 120>}, {pipeline_mode = #tpu.pipeline_mode<synchronous>, transform_indices = @transform_2, window_bounds = array<i64: 256, 120>}, {pipeline_mode = #tpu.pipeline_mode<synchronous>, transform_indices = @transform_3, window_bounds = array<i64: 4, 120>}, {transform_indices = @transform_4, window_bounds = array<i64: 2, 120>}]} {
    %c0 = arith.constant 0 : index
    %c0_0 = arith.constant 0 : index
    %0 = vector.load %arg1[%c0, %c0_0] : memref<2x120xf32, #tpu.memory_space<vmem>>, vector<2x120xf32>
    %c0_1 = arith.constant 0 : index
    %c0_2 = arith.constant 0 : index
    %1 = vector.load %arg4[%c0_1, %c0_2] : memref<4x120xf32, #tpu.memory_space<vmem>>, vector<4x120xf32>
    %cst = arith.constant 0.000000e+00 : bf16
    %2 = vector.broadcast %cst : bf16 to vector<2x256xbf16>
    %c0_3 = arith.constant 0 : index
    %c0_4 = arith.constant 0 : index
    %3 = vector.load %arg6[%c0_3, %c0_4] : memref<2x256xbf16, #tpu.memory_space<vmem>>, vector<2x256xbf16>
    tpu.vector_store %arg6[%c0_3, %c0_4], %2 {strides = array<i32>} : memref<2x256xbf16, #tpu.memory_space<vmem>>, vector<2x256xbf16>,
    %4 = arith.truncf %0 : vector<2x120xf32> to vector<2x120xbf16>
    %5 = arith.extf %4 : vector<2x120xbf16> to vector<2x120xf32>
    %6 = arith.subf %0, %5 : vector<2x120xf32>
    %7 = arith.truncf %6 : vector<2x120xf32> to vector<2x120xbf16>
    %c0_5 = arith.constant 0 : index
    %c0_6 = arith.constant 0 : index
    %8 = vector.load %arg6[%c0_5, %c0_6] : memref<2x256xbf16, #tpu.memory_space<vmem>>, vector<2x120xbf16>
    tpu.vector_store %arg6[%c0_5, %c0_6], %4 {strides = array<i32>} : memref<2x256xbf16, #tpu.memory_space<vmem>>, vector<2x120xbf16>,
    %c0_7 = arith.constant 0 : index
    %c128 = arith.constant 128 : index
    %9 = vector.load %arg6[%c0_7, %c128] : memref<2x256xbf16, #tpu.memory_space<vmem>>, vector<2x120xbf16>
    tpu.vector_store %arg6[%c0_7, %c128], %7 {strides = array<i32>} : memref<2x256xbf16, #tpu.memory_space<vmem>>, vector<2x120xbf16>,
    %c0_8 = arith.constant 0 : index
    %c0_9 = arith.constant 0 : index
    %10 = vector.load %arg6[%c0_8, %c0_9] : memref<2x256xbf16, #tpu.memory_space<vmem>>, vector<2x256xbf16>
    %c0_10 = arith.constant 0 : index
    %c0_11 = arith.constant 0 : index
    %11 = vector.load %arg2[%c0_10, %c0_11] : memref<256x120xbf16, #tpu.memory_space<vmem>>, vector<256x120xbf16>
    %cst_12 = arith.constant dense<0.000000e+00> : vector<2x120xf32>
    %12 = tpu.matmul %10, %11, %cst_12 {dimension_numbers = #tpu.dot_dimension_numbers<[1], [0], [0], [1], [0, 0, 1, 1], [], []>} : vector<2x256xbf16>, vector<256x120xbf16>, vector<2x120xf32> -> vector<2x120xf32>
    %13 = vector.extract_strided_slice %1 {offsets = [0, 0], sizes = [1, 120], strides = [1, 1]} : vector<4x120xf32> to vector<1x120xf32>
    %14 = vector.broadcast %13 : vector<1x120xf32> to vector<2x120xf32>
    %15 = arith.mulf %12, %14 : vector<2x120xf32>
    %16 = arith.subf %0, %15 : vector<2x120xf32>
    %17 = arith.mulf %16, %16 : vector<2x120xf32>
    %18 = arith.truncf %17 : vector<2x120xf32> to vector<2x120xbf16>
    %19 = arith.extf %18 : vector<2x120xbf16> to vector<2x120xf32>
    %20 = arith.subf %17, %19 : vector<2x120xf32>
    %21 = arith.truncf %20 : vector<2x120xf32> to vector<2x120xbf16>
    %c0_13 = arith.constant 0 : index
    %c0_14 = arith.constant 0 : index
    %22 = vector.load %arg6[%c0_13, %c0_14] : memref<2x256xbf16, #tpu.memory_space<vmem>>, vector<2x120xbf16>
    tpu.vector_store %arg6[%c0_13, %c0_14], %18 {strides = array<i32>} : memref<2x256xbf16, #tpu.memory_space<vmem>>, vector<2x120xbf16>,
    %c0_15 = arith.constant 0 : index
    %c128_16 = arith.constant 128 : index
    %23 = vector.load %arg6[%c0_15, %c128_16] : memref<2x256xbf16, #tpu.memory_space<vmem>>, vector<2x120xbf16>
    tpu.vector_store %arg6[%c0_15, %c128_16], %21 {strides = array<i32>} : memref<2x256xbf16, #tpu.memory_space<vmem>>, vector<2x120xbf16>,
    %c0_17 = arith.constant 0 : index
    %c0_18 = arith.constant 0 : index
    %24 = vector.load %arg6[%c0_17, %c0_18] : memref<2x256xbf16, #tpu.memory_space<vmem>>, vector<2x256xbf16>
    %c0_19 = arith.constant 0 : index
    %c0_20 = arith.constant 0 : index
    %25 = vector.load %arg3[%c0_19, %c0_20] : memref<256x120xbf16, #tpu.memory_space<vmem>>, vector<256x120xbf16>
    %cst_21 = arith.constant dense<0.000000e+00> : vector<2x120xf32>
    %26 = tpu.matmul %24, %25, %cst_21 {dimension_numbers = #tpu.dot_dimension_numbers<[1], [0], [0], [1], [0, 0, 1, 1], [], []>} : vector<2x256xbf16>, vector<256x120xbf16>, vector<2x120xf32> -> vector<2x120xf32>
    %27 = vector.extract_strided_slice %1 {offsets = [1, 0], sizes = [1, 120], strides = [1, 1]} : vector<4x120xf32> to vector<1x120xf32>
    %28 = vector.broadcast %27 : vector<1x120xf32> to vector<2x120xf32>
    %29 = arith.mulf %26, %28 : vector<2x120xf32>
    %cst_22 = arith.constant 9.99999993E-9 : f32
    %30 = vector.broadcast %cst_22 : f32 to vector<2x120xf32>
    %31 = arith.addf %29, %30 : vector<2x120xf32>
    %32 = math.rsqrt %31 : vector<2x120xf32>
    %33 = vector.extract_strided_slice %1 {offsets = [2, 0], sizes = [1, 120], strides = [1, 1]} : vector<4x120xf32> to vector<1x120xf32>
    %34 = vector.broadcast %33 : vector<1x120xf32> to vector<2x120xf32>
    %35 = arith.mulf %32, %34 : vector<2x120xf32>
    %36 = arith.mulf %16, %35 : vector<2x120xf32>
    %37 = vector.extract_strided_slice %1 {offsets = [3, 0], sizes = [1, 120], strides = [1, 1]} : vector<4x120xf32> to vector<1x120xf32>
    %38 = vector.broadcast %37 : vector<1x120xf32> to vector<2x120xf32>
    %39 = arith.addf %36, %38 : vector<2x120xf32>
    %c0_23 = arith.constant 0 : index
    %c0_24 = arith.constant 0 : index
    %40 = vector.load %arg5[%c0_23, %c0_24] : memref<2x120xf32, #tpu.memory_space<vmem>>, vector<2x120xf32>
    tpu.vector_store %arg5[%c0_23, %c0_24], %39 {strides = array<i32>} : memref<2x120xf32, #tpu.memory_space<vmem>>, vector<2x120xf32>,
    return
  }
  func.func @transform_0(%arg0: i32) -> (i32, i32) {
    %c0_i32 = arith.constant 0 : i32
    %c0_i32_0 = arith.constant 0 : i32
    return %arg0, %c0_i32 : i32, i32
  }
  func.func @transform_1(%arg0: i32) -> (i32, i32) {
    %c0_i32 = arith.constant 0 : i32
    %c0_i32_0 = arith.constant 0 : i32
    %c0_i32_1 = arith.constant 0 : i32
    return %c0_i32, %c0_i32_0 : i32, i32
  }
  func.func @transform_2(%arg0: i32) -> (i32, i32) {
    %c0_i32 = arith.constant 0 : i32
    %c0_i32_0 = arith.constant 0 : i32
    %c0_i32_1 = arith.constant 0 : i32
    return %c0_i32, %c0_i32_0 : i32, i32
  }
  func.func @transform_3(%arg0: i32) -> (i32, i32) {
    %c0_i32 = arith.constant 0 : i32
    %c0_i32_0 = arith.constant 0 : i32
    %c0_i32_1 = arith.constant 0 : i32
    return %c0_i32, %c0_i32_0 : i32, i32
  }
  func.func @transform_4(%arg0: i32) -> (i32, i32) {
    %c0_i32 = arith.constant 0 : i32
    %c0_i32_0 = arith.constant 0 : i32
    return %arg0, %c0_i32 : i32, i32
  }
}

</mosaic_0001>

<bundles_post_ra>
// kernel: tpu_custom_call.1
= control target key start
LH: loop header
LB: loop body
LE: loop exit
PB: predicated region body
PF: predicated region fallthrough
CT: control target
= control target key end

     0   :  { %v603_v2 = vmov 0   ;;  %v74_v10 = vlaneseq  ;;  %vm26_vm0 = vcmask 974848   ;;  %v604_v23 = vmov 1966171168   ;;  %s762_s0 = inlined_call_operand.vmem [shape: f32[2,120], index: 0, kind: input, shape index: {}]   ;;  %s763_s1 = inlined_call_operand.vmem [shape: bf16[256,120], index: 1, kind: input, shape index: {}]   ;;  %s764_s2 = inlined_call_operand.vmem [shape: bf16[256,120], index: 2, kind: input, shape index: {}]   ;;  %s765_s3 = inlined_call_operand.vmem [shape: f32[4,120], index: 3, kind: input, shape index: {}]   ;;  %s766_s4 = inlined_call_operand.hbm [shape: f32[2,120], index: 4, kind: output, shape index: {}]  }
   0x1   :  { %v545_v0 = vld [vmem:[%s763_s1 + $0x40] sm:$0xff]   ;;  %21 = vst [vmem:[#allocation2] sm:$0x3] %v603_v2  ;;  %v547_v3 = vld [vmem:[%s763_s1 + $0x48] sm:$0xff]   ;;  %v549_v5 = vld [vmem:[%s763_s1 + $0x50] sm:$0xff]   ;;  %v72_v24 = vunpack.c.l.s4 %v604_v23 }
   0x2   :  { %v546_v1 = vld [vmem:[%s763_s1] sm:$0xff]   ;;  %498 = vmatprep.subr.bf16.mxu0 %v545_v0  ;;  %v548_v4 = vld [vmem:[%s763_s1 + $0x8] sm:$0xff]   ;;  %v550_v6 = vld [vmem:[%s763_s1 + $0x10] sm:$0xff]   ;;  %v674_v16 = vshrl.u32 %v74_v10, 7 }
   0x3   :  { %499 = vmatpush3.bf16.msra.mxu0 %v546_v1  ;;  %v551_v7 = vld [vmem:[%s763_s1 + $0x58] sm:$0xff]   ;;  %v553_v9 = vld [vmem:[%s763_s1 + $0x60] sm:$0xff]   ;;  %v555_v12 = vld [vmem:[%s763_s1 + $0x68] sm:$0xff]   ;;  %v73_v27 = vunpack.c.0.s8 %v72_v24 }
   0x4   :  { %500 = vmatprep.subr.bf16.mxu0 %v547_v3  ;;  %v552_v8 = vld [vmem:[%s763_s1 + $0x18] sm:$0xff]   ;;  %v554_v11 = vld [vmem:[%s763_s1 + $0x20] sm:$0xff]   ;;  %v556_v14 = vld [vmem:[%s763_s1 + $0x28] sm:$0xff]  }
   0x5   :  { %v667_v13 = vld [vmem:[%s762_s0] sm:$0x3]  ;;  %v557_v18 = vld [vmem:[%s763_s1 + $0x70] sm:$0xff]   ;;  %v559_v22 = vld [vmem:[%s763_s1 + $0x78] sm:$0xff]  }
   0x6   :  { %v22_v15 = vpack.c.bf16 %v667_v13, %v667_v13  ;;  %v561_v17 = vld [vmem:[%s764_s2 + $0x40] sm:$0xff]   ;;  %v558_v20 = vld [vmem:[%s763_s1 + $0x30] sm:$0xff]   ;;  %v560_v26 = vld [vmem:[%s763_s1 + $0x38] sm:$0xff]  }
   0x7   :  { %501 = vmatpush3.bf16.msra.mxu0 %v548_v4  ;;  %520 = vmatprep.subr.bf16.mxu1 %v561_v17 }
   0x8   :  { %502 = vmatprep.subr.bf16.mxu0 %v549_v5  ;;  %v23_v19 = vunpack.c.l.bf16 %v22_v15  ;;  %27 = vst.msk [vmem:[#allocation2] sm:$0x1] %vm26_vm0, %v22_v15 }
   0xa   :  { %v24_v21 = vsub.f32 %v667_v13, %v23_v19 }
   0xb   :  { %503 = vmatpush3.bf16.msra.mxu0 %v550_v6 }
   0xc   :  { %504 = vmatprep.subr.bf16.mxu0 %v551_v7  ;;  %v25_v25 = vpack.c.bf16 %v24_v21, %v24_v21 }
   0xe   :  { %28 = vst.msk [vmem:[#allocation2 + $0x1] sm:$0x1] %vm26_vm0, %v25_v25 }
   0xf   :  { %505 = vmatpush3.bf16.msra.mxu0 %v552_v8 }
  0x10   :  { %506 = vmatprep.subr.bf16.mxu0 %v553_v9 }
  0x13   :  { %507 = vmatpush3.bf16.msra.mxu0 %v554_v11 }
  0x14   :  { %508 = vmatprep.subr.bf16.mxu0 %v555_v12 }
  0x17   :  { %509 = vmatpush3.bf16.msra.mxu0 %v556_v14 }
  0x18   :  { %510 = vmatprep.subr.bf16.mxu0 %v557_v18 }
  0x1b   :  { %511 = vmatpush3.bf16.msra.mxu0 %v558_v20 }
  0x1c   :  { %9 = vsyncpa [#allocation4], 0  ;;  %512 = vmatprep.subr.bf16.mxu0 %v559_v22  ;;  %v76_v28 = vsub.s32 %v73_v27, %v674_v16  ;;  %v464_v29 = vld.sshfl [vmem:[#allocation2] sm:$0x11 pattern:$0x75316420] }
  0x1d   :  { %v70_v30 = vcombine.high %v464_v29, %v464_v29  ;;  %v562_v33 = vld [vmem:[%s764_s2] sm:$0xff]   ;;  %v563_v34 = vld [vmem:[%s764_s2 + $0x48] sm:$0xff]   ;;  %v565_v36 = vld [vmem:[%s764_s2 + $0x50] sm:$0xff]   ;;  %v225_v48 = vsub.s32 0, %v674_v16  ;;  %v432_v3 = vsub.s32 1, %v674_v16  ;;  %v439_v12 = vsub.s32 2, %v674_v16 }
  0x1e   :  { %v77_v31 = vrot.slane %v464_v29, %v76_v28  ;;  %521 = vmatpush3.bf16.msra.mxu1 %v562_v33  ;;  %v564_v35 = vld [vmem:[%s764_s2 + $0x8] sm:$0xff]   ;;  %v566_v37 = vld [vmem:[%s764_s2 + $0x10] sm:$0xff]   ;;  %v567_v38 = vld [vmem:[%s764_s2 + $0x58] sm:$0xff]   ;;  %v445_v14 = vsub.s32 3, %v674_v16  ;;  %vm448_vm1 = vcmask 975872  }
  0x1f   :  { %513 = vmatpush3.bf16.msra.mxu0 %v560_v26  ;;  %v84_v32 = vrot.slane %v70_v30, %v76_v28  ;;  %522 = vmatprep.subr.bf16.mxu1 %v563_v34  ;;  %v568_v39 = vld [vmem:[%s764_s2 + $0x18] sm:$0xff]   ;;  %v569_v40 = vld [vmem:[%s764_s2 + $0x60] sm:$0xff]   ;;  %v571_v42 = vld [vmem:[%s764_s2 + $0x68] sm:$0xff]  }
  0x20   :  { %v570_v41 = vld [vmem:[%s764_s2 + $0x20] sm:$0xff]   ;;  %v572_v43 = vld [vmem:[%s764_s2 + $0x28] sm:$0xff]   ;;  %v573_v44 = vld [vmem:[%s764_s2 + $0x70] sm:$0xff]  }
  0x21   :  { %215 = vmatprep.mubr.bf16.mxu0 %v84_v32  ;;  %v574_v45 = vld [vmem:[%s764_s2 + $0x30] sm:$0xff]   ;;  %v575_v46 = vld [vmem:[%s764_s2 + $0x78] sm:$0xff]   ;;  %v20_v49 = vld [vmem:[%s765_s3] sm:$0xf] }
  0x22   :  { %216 = vmatmul.mubr.bf16.vlgmr.msra.gmra.mrb[0].mxu0 %v77_v31  ;;  %523 = vmatpush3.bf16.msra.mxu1 %v564_v35  ;;  %v576_v47 = vld [vmem:[%s764_s2 + $0x38] sm:$0xff]   ;;  %v226_v51 = vrot.slane %v20_v49, %v225_v48  ;;  %v433_v5 = vrot.slane %v20_v49, %v432_v3  ;;  %v446_v18 = vrot.slane %v20_v49, %v445_v14  ;;  %s605_s2 = smov [#allocation3]  }
  0x23   :  { %524 = vmatprep.subr.bf16.mxu1 %v565_v36  ;;  %s456_s3 = sshll.u32 %s605_s2, 4  ;;  %s457_s3 = int_to_ptr.vmem [resolvable:$true] %s456_s3 }
  0x24   :  { %s579_s27 = scalar_lea.vmem %s457_s3, 32  ;;  %p584_p1 = scmp.lt.s32.totalorder %s457_s3, %s457_s3 }
  0x25   :  { %p580_p0 = scmp.ne.s32.totalorder %s457_s3, %s579_s27  ;;  %p585_p2 = scmp.lt.s32.totalorder %s579_s27, %s579_s27 }
  0x26   :  { %525 = vmatpush3.bf16.msra.mxu1 %v566_v37 }
  0x27   :  { %526 = vmatprep.subr.bf16.mxu1 %v567_v38  ;;  %p586_p3 = por %p585_p2, %p584_p1 }
  0x29   :  { %p587_p4 = pnand %p586_p3, %p580_p0 }
  0x2a   :  { %527 = vmatpush3.bf16.msra.mxu1 %v568_v39 }
  0x2b   :  { %528 = vmatprep.subr.bf16.mxu1 %v569_v40 }
  0x2e   :  { %529 = vmatpush3.bf16.msra.mxu1 %v570_v41 }
  0x2f   :  { %530 = vmatprep.subr.bf16.mxu1 %v571_v42 }
  0x32   :  { %531 = vmatpush3.bf16.msra.mxu1 %v572_v43 }
  0x33   :  { %532 = vmatprep.subr.bf16.mxu1 %v573_v44 }
  0x36   :  { %533 = vmatpush3.bf16.msra.mxu1 %v574_v45 }
  0x37   :  { %534 = vmatprep.subr.bf16.mxu1 %v575_v46 }
  0x3a   :  { %535 = vmatpush3.bf16.msra.mxu1 %v576_v47 }
  0xf5   :  { %v514_v50 = vpop.f32.mrb[0].mxu0 }
  0xf6   :  { %v515_v52 = vpop.f32.mrb[1].mxu0 }
  0xf7   :  { %v516_v53 = vadd.f32 %v515_v52, %v514_v50  ;;  %v517_v54 = vpop.f32.mrb[2].mxu0 }
  0xf8   :  { %v518_v55 = vpop.f32.mrb[3].mxu0 }
  0xf9   :  { %v227_v56 = vmul.f32 %v516_v53, %v226_v51 }
  0xfb   :  { %v228_v57 = vsub.f32 %v667_v13, %v227_v56  ;;  %v440_v13 = vrot.slane %v20_v49, %v439_v12 }
  0xfd   :  { %v229_v58 = vmul.f32 %v228_v57, %v228_v57 }
  0xff   :  { %v230_v59 = vpack.c.bf16 %v229_v58, %v229_v58 }
 0x101   :  { %v231_v60 = vunpack.c.l.bf16 %v230_v59  ;;  %234 = vst.msk [vmem:[#allocation2] sm:$0x1] %vm26_vm0, %v230_v59 }
 0x103   :  { %v232_v61 = vsub.f32 %v229_v58, %v231_v60 }
 0x105   :  { %v233_v62 = vpack.c.bf16 %v232_v61, %v232_v61 }
 0x107   :  { %235 = vst.msk [vmem:[#allocation2 + $0x1] sm:$0x1] %vm26_vm0, %v233_v62 }
 0x10e   :  { %v481_v63 = vld.sshfl [vmem:[#allocation2] sm:$0x11 pattern:$0x75316420] }
 0x10f   :  { %v277_v0 = vcombine.high %v481_v63, %v481_v63  ;;  %v284_v2 = vrot.slane %v481_v63, %v76_v28 }
 0x111   :  { %v291_v1 = vrot.slane %v277_v0, %v76_v28 }
 0x113   :  { %422 = vmatprep.mubr.bf16.mxu1 %v291_v1 }
 0x114   :  { %423 = vmatmul.mubr.bf16.vlgmr.msra.gmra.mrb[0].mxu1 %v284_v2 }
 0x1e7   :  { %v536_v4 = vpop.f32.mrb[0].mxu1 }
 0x1e8   :  { %v537_v6 = vpop.f32.mrb[1].mxu1 }
 0x1e9   :  { %v538_v7 = vadd.f32 %v537_v6, %v536_v4  ;;  %v539_v8 = vpop.f32.mrb[2].mxu1 }
 0x1ea   :  { %v540_v9 = vpop.f32.mrb[3].mxu1 }
 0x1eb   :  { %v434_v10 = vmul.f32 %v538_v7, %v433_v5 }
 0x1ed   :  { %v435_v11 = vadd.f32 1e-08, %v434_v10 }
 0x1ef   :  { %577 = vrsqrt.f32 %v435_v11 }
 0x1f9   :  { %v578_v15 = vpop.eup %577 }
 0x1fa   :  { %v441_v17 = vmul.f32 %v578_v15, %v440_v13 }
 0x1fc   :  { %v442_v19 = vmul.f32 %v441_v17, %v228_v57 }
 0x1fe   :  { %v447_v20 = vadd.f32 %v446_v18, %v442_v19 }
 0x200   :  { %449 = vst.msk [vmem:[#allocation3] sm:$0x3] %vm448_vm1, %v447_v20 }
 0x201   :  { %590 = shalt.err (!%p587_p4)
}
 0x202   :  { %s591_s30 = scalar_lea.hbm %s766_s4, 32 }
 0x203   :  { %p592_p5 = scmp.ne.s32.totalorder %s766_s4, %s591_s30  ;;  %p595_p6 = scmp.lt.u32.totalorder %s591_s30, %s766_s4 }
 0x205   :  { %p597_p7 = pnand %p595_p6, %p592_p5 }
 0x207   :  { %600 = shalt.err (!%p597_p7)
}
 0x208   :  { %459 = dma.vmem_to_hbm [thread:$0]  %s457_s3, 32, %s766_s4, [#allocation4]  }
 0x209   :  { %601 = dma.done.wait [#allocation4], 32  }
 0x20a   :  { %602 = vsyncadd [#allocation4], 4294967264 }
 0x20b   :  { %463 = vsyncpa [#allocation4], 1 }

</bundles_post_ra>
